<compile_context>
chip_gen: v7x
topology: tpu7x:2x2x1
jax: 0.10.0
libtpu: 0.0.40
codegen_flags: <defaults>
</compile_context>

<pallas_src>
import jax
import jax.numpy as jnp
from jax.experimental import pallas as pl
from jax.experimental.pallas import tpu as pltpu


def rmsnorm_kernel(x_ref, g_ref, o_ref):
    # x_ref: (TB, C, TL) block, g_ref: (1, C, 1), o_ref: (TB, C, TL)
    x = x_ref[...].astype(jnp.float32)                     # single load + cast
    # F.normalize(x, dim=1): x / max(||x||_2 along dim 1, eps), eps = 1e-12
    sq_sum = jnp.sum(x * x, axis=1, keepdims=True)         # (TB, 1, TL)
    denom = jnp.maximum(jnp.sqrt(sq_sum), 1e-12)
    # Fold sqrt(C) into the reciprocal of the *reduced* array: O(TB*TL) work
    # instead of a C*TL-wide divide + extra multiply.
    scale = float(x.shape[1]) ** 0.5                        # sqrt(C)
    inv = scale / denom                                     # exact, (TB, 1, TL)
    g = g_ref[...].astype(jnp.float32)                      # (1, C, 1)
    out = (x * inv) * g
    o_ref[...] = out.astype(o_ref.dtype)


def _choose_tiles(B, C, L, itemsize, target_block_bytes=2 * 1024 * 1024):
    """Pick (TB, TL): lane-aligned L tile + batched leading dim.

    TL: multiple of 128 that divides L (largest one under the byte budget);
        falls back to full L when L is not lane-aligned (full extent is legal).
    TB: divisor of B so that each block moves >= ~512 KiB when possible
        (per-grid-step overhead ~0.35 us dominates tiny blocks).
    Budget (~2 MiB/block) keeps 2 double-buffered copies of in+out well under
    the 32 MiB default scoped VMEM (and v7x's 64 MiB physical VMEM).
    """
    if L % 128 == 0:
        cap = max(128, target_block_bytes // max(1, C * itemsize))
        cap = min(cap, L)
        TL = 128
        for t in range(128, cap + 1, 128):
            if L % t == 0:
                TL = t
    else:
        TL = L  # full extent is always a legal block dim

    block_bytes = C * TL * itemsize
    want_tb = max(1, (512 * 1024) // max(1, block_bytes))
    TB = 1
    for t in range(1, min(B, want_tb) + 1):
        if B % t == 0:
            TB = t
    return TB, TL


def rms_norm(x, g):
    """x: (B, C, L), g: (1, C, 1) -> (B, C, L)"""
    B, C, L = x.shape
    itemsize = jnp.dtype(x.dtype).itemsize
    TB, TL = _choose_tiles(B, C, L, itemsize)

    grid = (B // TB, pl.cdiv(L, TL))
    return pl.pallas_call(
        rmsnorm_kernel,
        out_shape=jax.ShapeDtypeStruct((B, C, L), x.dtype),
        grid_spec=pltpu.PrefetchScalarGridSpec(
            num_scalar_prefetch=0,
            grid=grid,
            in_specs=[
                pl.BlockSpec((TB, C, TL), lambda b, l: (b, 0, l)),
                pl.BlockSpec((1, C, 1), lambda b, l: (0, 0, 0)),
            ],
            out_specs=pl.BlockSpec((TB, C, TL), lambda b, l: (b, 0, l)),
        ),
        compiler_params=pltpu.CompilerParams(
            dimension_semantics=("parallel", "parallel")
        ),
    )(x, g)


def pre_norm(x, g, fn):
    """PreNorm.forward: y = RMSNorm(x); return fn(y) + y."""
    # TODO(synk): `fn` is an arbitrary user-supplied module (e.g. attention);
    # it is applied as a plain JAX callable on the kernel output, not fused.
    y = rms_norm(x, g)
    return fn(y) + y


def rms_norm_ref(x, g):
    """Pure-JAX reference matching F.normalize(x, dim=1) * g * sqrt(C)."""
    C = x.shape[1]
    norm = jnp.sqrt(jnp.sum(x.astype(jnp.float32) ** 2, axis=1, keepdims=True))
    denom = jnp.maximum(norm, 1e-12)
    return (x / denom * g * (C ** 0.5)).astype(x.dtype)


def pre_norm_ref(x, g, fn):
    y = rms_norm_ref(x, g)
    return fn(y) + y


if __name__ == "__main__":
    key = jax.random.PRNGKey(0)
    B, C, L = 2, 8, 128
    x = jax.random.normal(key, (B, C, L), dtype=jnp.float32)
    # Deterministic parameter init: RMSNorm initializes g to ones(1, dim, 1).
    g = jnp.ones((1, C, 1), dtype=jnp.float32)
    # Stand-in for the wrapped `fn` module (identity keeps the demo deterministic).
    fn = lambda t: t

    out = pre_norm(x, g, fn)
    out = jax.block_until_ready(out)

    expected = pre_norm_ref(x, g, fn)
    assert out.shape == (B, C, L)
    assert jnp.allclose(out, expected, atol=1e-5, rtol=1e-5), "mismatch vs reference"

    print("KERNEL_OK")
</pallas_src>

<mosaic_0001>
module attributes {stable_mosaic.version = 11 : i64} {
  func.func @rmsnorm_kernel(%arg0: i32, %arg1: i32, %arg2: memref<2x8x128xf32, #tpu.memory_space<vmem>>, %arg3: memref<1x8x1xf32, #tpu.memory_space<vmem>>, %arg4: memref<2x8x128xf32, #tpu.memory_space<vmem>>) attributes {dimension_semantics = [#tpu.dimension_semantics<parallel>, #tpu.dimension_semantics<parallel>], iteration_bounds = array<i64: 1, 1>, scalar_prefetch = 0 : i64, scratch_operands = 0 : i64, tpu.core_type = #tpu.core_type<tc>, window_params = [{transform_indices = @transform_0, window_bounds = array<i64: 2, 8, 128>}, {pipeline_mode = #tpu.pipeline_mode<synchronous>, transform_indices = @transform_1, window_bounds = array<i64: 1, 8, 1>}, {transform_indices = @transform_2, window_bounds = array<i64: 2, 8, 128>}]} {
    %c0 = arith.constant 0 : index
    %c0_0 = arith.constant 0 : index
    %c0_1 = arith.constant 0 : index
    %0 = vector.load %arg2[%c0, %c0_0, %c0_1] : memref<2x8x128xf32, #tpu.memory_space<vmem>>, vector<2x8x128xf32>
    %1 = arith.mulf %0, %0 : vector<2x8x128xf32>
    %cst = arith.constant dense<0.000000e+00> : vector<2x128xf32>
    %2 = vector.multi_reduction <add>, %1, %cst [1] : vector<2x8x128xf32> to vector<2x128xf32>
    %3 = vector.shape_cast %2 : vector<2x128xf32> to vector<2x1x128xf32>
    %4 = math.sqrt %3 : vector<2x1x128xf32>
    %cst_2 = arith.constant 9.99999996E-13 : f32
    %5 = vector.broadcast %cst_2 : f32 to vector<2x1x128xf32>
    %6 = arith.maximumf %4, %5 : vector<2x1x128xf32>
    %cst_3 = arith.constant 2.82842708 : f32
    %7 = vector.broadcast %cst_3 : f32 to vector<2x1x128xf32>
    %8 = arith.divf %7, %6 : vector<2x1x128xf32>
    %c0_4 = arith.constant 0 : index
    %c0_5 = arith.constant 0 : index
    %c0_6 = arith.constant 0 : index
    %9 = vector.load %arg3[%c0_4, %c0_5, %c0_6] : memref<1x8x1xf32, #tpu.memory_space<vmem>>, vector<1x8x1xf32>
    %10 = vector.broadcast %8 : vector<2x1x128xf32> to vector<2x8x128xf32>
    %11 = arith.mulf %0, %10 : vector<2x8x128xf32>
    %12 = vector.broadcast %9 : vector<1x8x1xf32> to vector<2x8x128xf32>
    %13 = arith.mulf %11, %12 : vector<2x8x128xf32>
    %c0_7 = arith.constant 0 : index
    %c0_8 = arith.constant 0 : index
    %c0_9 = arith.constant 0 : index
    %14 = vector.load %arg4[%c0_7, %c0_8, %c0_9] : memref<2x8x128xf32, #tpu.memory_space<vmem>>, vector<2x8x128xf32>
    tpu.vector_store %arg4[%c0_7, %c0_8, %c0_9], %13 {strides = array<i32>} : memref<2x8x128xf32, #tpu.memory_space<vmem>>, vector<2x8x128xf32>,
    return
  }
  func.func @transform_0(%arg0: i32, %arg1: i32) -> (i32, i32, i32) {
    %c0_i32 = arith.constant 0 : i32
    %c0_i32_0 = arith.constant 0 : i32
    return %arg0, %c0_i32, %arg1 : i32, i32, i32
  }
  func.func @transform_1(%arg0: i32, %arg1: i32) -> (i32, i32, i32) {
    %c0_i32 = arith.constant 0 : i32
    %c0_i32_0 = arith.constant 0 : i32
    %c0_i32_1 = arith.constant 0 : i32
    %c0_i32_2 = arith.constant 0 : i32
    return %c0_i32, %c0_i32_0, %c0_i32_1 : i32, i32, i32
  }
  func.func @transform_2(%arg0: i32, %arg1: i32) -> (i32, i32, i32) {
    %c0_i32 = arith.constant 0 : i32
    %c0_i32_0 = arith.constant 0 : i32
    return %arg0, %c0_i32, %arg1 : i32, i32, i32
  }
}

</mosaic_0001>

<bundles_post_ra>
// kernel: tpu_custom_call.1
= control target key start
LH: loop header
LB: loop body
LE: loop exit
PB: predicated region body
PF: predicated region fallthrough
CT: control target
= control target key end

     0   :  { %7 = vsyncpa [#allocation3], 0  ;;  %s206_s0 = inlined_call_operand.hbm [shape: f32[2,8,128], index: 0, kind: input, shape index: {}]   ;;  %s207_s1 = inlined_call_operand.vmem [shape: f32[1,8,1], index: 1, kind: input, shape index: {}]   ;;  %s208_s2 = inlined_call_operand.hbm [shape: f32[2,8,128], index: 2, kind: output, shape index: {}]  }
   0x1   :  { %8 = vsyncpa [#allocation4], 0  ;;  %s153_s9 = smov [#allocation2]   ;;  %s105_s13 = scalar_lea.hbm %s206_s0, 256 }
   0x2   :  { %s14_s10 = sshll.u32 %s153_s9, 4  ;;  %p106_p0 = scmp.ne.s32.totalorder %s206_s0, %s105_s13  ;;  %s15_s10 = int_to_ptr.vmem [resolvable:$true] %s14_s10 }
   0x3   :  { %p109_p1 = scmp.lt.u32.totalorder %s105_s13, %s206_s0 }
   0x5   :  { %p111_p2 = pnand %p109_p1, %p106_p0 }
   0x7   :  { %114 = shalt.err (!%p111_p2)
}
   0x8   :  { %s115_s18 = scalar_lea.vmem %s15_s10, 256  ;;  %p120_p4 = scmp.lt.s32.totalorder %s15_s10, %s15_s10 }
   0x9   :  { %p116_p3 = scmp.ne.s32.totalorder %s15_s10, %s115_s18  ;;  %p121_p5 = scmp.lt.s32.totalorder %s115_s18, %s115_s18 }
   0xb   :  { %p122_p6 = por %p121_p5, %p120_p4 }
   0xd   :  { %p123_p7 = pnand %p122_p6, %p116_p3 }
   0xf   :  { %126 = shalt.err (!%p123_p7)
}
  0x10   :  { %s154_s19 = smov 128   ;;  %s155_s20 = smov 8  }
  0x11   :  { %20 = dma.hbm_to_vmem [thread:$0]  %s206_s0, 256, %s15_s10, [#allocation3], %s154_s19, %s154_s19, %s155_s20  }
  0x12   :  { %149 = dma.done.wait [#allocation3], 256  }
  0x13   :  { %150 = vsyncadd [#allocation3], 4294967040  ;;  %v156_v0 = vmov 0   ;;  %v62_v1 = vld [vmem:[%s207_s1] sm:$0xff]  ;;  %v27_v3 = vld [vmem:[#allocation2 + $0x8] sm:$0xff]  ;;  %s157_s0 = smov [#allocation5]  }
  0x14   :  { %96 = vset.pattern.permute.xlu0 %v156_v0  ;;  %v26_v2 = vld [vmem:[#allocation2] sm:$0xff]  ;;  %v29_v5 = vmul.f32 %v27_v3, %v27_v3  ;;  %s79_s1 = sshll.u32 %s157_s0, 4  ;;  %s80_s1 = int_to_ptr.vmem [resolvable:$true] %s79_s1 }
  0x15   :  { %67 = vperm.xlu0 %96, %v62_v1   ;;  %v28_v4 = vmul.f32 %v26_v2, %v26_v2  ;;  %s127_s25 = scalar_lea.vmem %s80_s1, 256  ;;  %p132_p9 = scmp.lt.s32.totalorder %s80_s1, %s80_s1 }
  0x16   :  { %v36_v7 = vrot.slane %v29_v5, 4  ;;  %p128_p8 = scmp.ne.s32.totalorder %s80_s1, %s127_s25  ;;  %p133_p10 = scmp.lt.s32.totalorder %s127_s25, %s127_s25 }
  0x17   :  { %v30_v6 = vrot.slane %v28_v4, 4 }
  0x18   :  { %v37_v9 = vadd.f32 %v36_v7, %v29_v5  ;;  %p134_p11 = por %p133_p10, %p132_p9 }
  0x19   :  { %v31_v8 = vadd.f32 %v30_v6, %v28_v4 }
  0x1a   :  { %v38_v11 = vrot.slane %v37_v9, 2  ;;  %p135_p12 = pnand %p134_p11, %p128_p8 }
  0x1b   :  { %v32_v10 = vrot.slane %v31_v8, 2 }
  0x1c   :  { %v39_v13 = vadd.f32 %v38_v11, %v37_v9 }
  0x1d   :  { %v33_v12 = vadd.f32 %v32_v10, %v31_v8 }
  0x1e   :  { %v40_v15 = vrot.slane %v39_v13, 1 }
  0x1f   :  { %v34_v14 = vrot.slane %v33_v12, 1 }
  0x20   :  { %v41_v17 = vadd.f32 %v40_v15, %v39_v13 }
  0x21   :  { %v35_v16 = vadd.f32 %v34_v14, %v33_v12 }
  0x22   :  { %vm51_vm1 = vcmp.eq.f32.partialorder %v41_v17, inf  ;;  %v54_v24 = vand.u32 2147483648, %v41_v17  ;;  %vm53_vm3 = vcmp.eq.f32.partialorder %v41_v17, 0.0 }
  0x23   :  { %97 = vrsqrt.f32 %v35_v16  ;;  %vm44_vm0 = vcmp.eq.f32.partialorder %v35_v16, inf  ;;  %v47_v22 = vand.u32 2147483648, %v35_v16  ;;  %vm46_vm2 = vcmp.eq.f32.partialorder %v35_v16, 0.0 }
  0x24   :  { %99 = vrsqrt.f32 %v41_v17 }
  0x2d   :  { %v98_v18 = vpop.eup %97 }
  0x2e   :  { %v100_v19 = vpop.eup %99  ;;  %v43_v20 = vmul.f32 %v98_v18, %v35_v16 }
  0x2f   :  { %v50_v21 = vmul.f32 %v100_v19, %v41_v17 }
  0x30   :  { %v45_v23 = vsel %vm44_vm0, %v35_v16, %v43_v20 }
  0x31   :  { %v52_v25 = vsel %vm51_vm1, %v41_v17, %v50_v21  ;;  %v48_v26 = vsel %vm46_vm2, %v47_v22, %v45_v23 }
  0x32   :  { %v55_v27 = vsel %vm53_vm3, %v54_v24, %v52_v25  ;;  %v56_v28 = vmax.f32 %v48_v26, 1e-12 }
  0x33   :  { %v57_v29 = vmax.f32 %v55_v27, 1e-12 }
  0x34   :  { %101 = vrcp.f32 %v56_v28 }
  0x35   :  { %103 = vrcp.f32 %v57_v29 }
  0x3e   :  { %v102_v30 = vpop.eup %101 }
  0x3f   :  { %v104_v31 = vpop.eup %103  ;;  %v59_v32 = vmul.f32 2.828427, %v102_v30 }
  0x40   :  { %v61_v33 = vmul.f32 2.828427, %v104_v31 }
  0x41   :  { %v63_v34 = vmul.f32 %v59_v32, %v26_v2 }
  0x42   :  { %v64_v35 = vmul.f32 %v61_v33, %v27_v3 }
  0x94   :  { %v68_v36 = vpop.permute.xlu0 %67 }
  0x95   :  { %v70_v37 = vmul.f32 %v68_v36, %v63_v34  ;;  %v71_v38 = vmul.f32 %v68_v36, %v64_v35 }
  0x97   :  { %72 = vst [vmem:[#allocation5] sm:$0xff] %v70_v37  ;;  %73 = vst [vmem:[#allocation5 + $0x8] sm:$0xff] %v71_v38 }
  0x98   :  { %138 = shalt.err (!%p135_p12)
}
  0x99   :  { %s139_s28 = scalar_lea.hbm %s208_s2, 256 }
  0x9a   :  { %p140_p13 = scmp.ne.s32.totalorder %s208_s2, %s139_s28  ;;  %p143_p0 = scmp.lt.u32.totalorder %s139_s28, %s208_s2 }
  0x9c   :  { %p145_p1 = pnand %p143_p0, %p140_p13 }
  0x9e   :  { %148 = shalt.err (!%p145_p1)
}
  0x9f   :  { %85 = dma.vmem_to_hbm [thread:$0]  %s80_s1, 256, %s208_s2, [#allocation4], %s154_s19, %s154_s19, %s155_s20  }
  0xa0   :  { %151 = dma.done.wait [#allocation4], 256  }
  0xa1   :  { %152 = vsyncadd [#allocation4], 4294967040 }
  0xa2   :  { %89 = vsyncpa [#allocation3], 1 }
  0xa3   :  { %90 = vsyncpa [#allocation4], 1 }

</bundles_post_ra>
